<compile_context>
chip_gen: v7x
topology: tpu7x:2x2x1
jax: 0.10.0
libtpu: 0.0.40
codegen_flags: <defaults>
</compile_context>

<pallas_src>
import functools

import jax
import jax.numpy as jnp
from jax.experimental import pallas as pl
from jax.experimental.pallas import tpu as pltpu


def _round_up(n, m):
    return ((n + m - 1) // m) * m


def _vmem_budget_bytes():
    """Per-core VMEM budget with ~12.5% headroom for Mosaic internal scratch."""
    cap = 64 << 20  # conservative fallback (v7x physical VMEM per TC)
    try:
        info_fn = getattr(pltpu, "get_tpu_info", None)
        if info_fn is not None:
            cap = int(info_fn().vmem_capacity_bytes)
    except Exception:
        cap = 64 << 20
    return cap - max(8 << 20, cap // 8)


def _cost_estimate(flops, bytes_accessed):
    try:
        return pl.CostEstimate(flops=int(flops), transcendentals=0,
                               bytes_accessed=int(bytes_accessed))
    except Exception:
        return None


def _choose_tile_b(B, target):
    """Pick (TILE_B, Bp, n_steps).

    TILE_B is a multiple of 8 (sublane), Bp = n_steps * TILE_B >= B with minimal
    over-padding, tiles are <= ~target rows, and we use >= 2 grid steps whenever
    the batch allows so both TensorCores of a v7x chip get work (costs at most
    one extra ~0.35us grid step on single-TC parts).
    """
    B8 = _round_up(max(B, 1), 8)
    target = max(8, _round_up(int(target), 8))
    n = max(1, -(-B8 // target))
    if n < 2 and B8 >= 16:
        n = 2
    tile = _round_up(-(-B8 // n), 8)
    return tile, n * tile, n


def _largest_hp_tile(Hp):
    for c in (512, 256, 128):
        if Hp % c == 0:
            return c
    return Hp


# ---------------------------------------------------------------------------
# Fused path: all four HxH weights + biases VMEM-resident across the batch grid
# ---------------------------------------------------------------------------
def fc_kernel(x_ref, w1_ref, b1_ref, w2_ref, b2_ref, w3_ref, b3_ref,
              wl_ref, bl_ref, o_ref):
    # x tile: (TILE_B, Hp); weights: (Hp, Hp) in MXU-feed dtype; biases: (1, Hp) f32.
    x = x_ref[...]
    xm = x.astype(w1_ref.dtype)  # MXU feed (bf16 on v6e/v7x); no-op if f32.

    # fc branch: Linear -> ReLU, three times (f32 accumulate, f32 bias/ReLU).
    h = jnp.dot(xm, w1_ref[...], preferred_element_type=jnp.float32) + b1_ref[...]
    h = jnp.maximum(h, 0.0)
    h = jnp.dot(h.astype(w2_ref.dtype), w2_ref[...],
                preferred_element_type=jnp.float32) + b2_ref[...]
    h = jnp.maximum(h, 0.0)
    h = jnp.dot(h.astype(w3_ref.dtype), w3_ref[...],
                preferred_element_type=jnp.float32) + b3_ref[...]
    h = jnp.maximum(h, 0.0)

    # skip branch: single Linear (no activation).
    skip = jnp.dot(xm, wl_ref[...], preferred_element_type=jnp.float32) + bl_ref[...]

    o_ref[...] = (h + skip).astype(o_ref.dtype)


# ---------------------------------------------------------------------------
# Weight-streaming path (large H): per-layer tiled matmul with K accumulation
# ---------------------------------------------------------------------------
def _linear_kernel(x_ref, w_ref, b_ref, o_ref, acc_ref, *, relu):
    k = pl.program_id(2)

    @pl.when(k == 0)
    def _():
        acc_ref[...] = jnp.zeros_like(acc_ref)

    acc_ref[...] += jnp.dot(x_ref[...].astype(w_ref.dtype), w_ref[...],
                            preferred_element_type=jnp.float32)

    @pl.when(k == pl.num_programs(2) - 1)
    def _():
        r = acc_ref[...] + b_ref[...]
        if relu:
            r = jnp.maximum(r, 0.0)
        o_ref[...] = r.astype(o_ref.dtype)


def _linear_tiled(xp, w, b, *, relu, tm, tn, tk):
    Bp, Hp = xp.shape
    w_bytes = w.dtype.itemsize
    grid = (Bp // tm, Hp // tn, Hp // tk)
    return pl.pallas_call(
        functools.partial(_linear_kernel, relu=relu),
        out_shape=jax.ShapeDtypeStruct((Bp, Hp), jnp.float32),
        grid=grid,
        in_specs=[pl.BlockSpec((tm, tk), lambda i, j, k: (i, k)),
                  pl.BlockSpec((tk, tn), lambda i, j, k: (k, j)),
                  pl.BlockSpec((1, tn), lambda i, j, k: (0, j))],
        out_specs=pl.BlockSpec((tm, tn), lambda i, j, k: (i, j)),
        scratch_shapes=[pltpu.VMEM((tm, tn), jnp.float32)],
        compiler_params=pltpu.CompilerParams(
            dimension_semantics=("parallel", "parallel", "arbitrary")),
        cost_estimate=_cost_estimate(
            flops=2 * Bp * Hp * Hp,
            bytes_accessed=Bp * Hp * xp.dtype.itemsize
                           + Hp * Hp * w_bytes + Hp * 4 + Bp * Hp * 4),
    )(xp, w, b)


def _fc_streaming(xp, prepared, *, tm, out_dtype):
    Hp = xp.shape[1]
    t = _largest_hp_tile(Hp)
    lin = functools.partial(_linear_tiled, tm=tm, tn=t, tk=t)
    h = lin(xp, prepared["w1"], prepared["b1"], relu=True)
    h = lin(h, prepared["w2"], prepared["b2"], relu=True)
    h = lin(h, prepared["w3"], prepared["b3"], relu=True)
    skip = lin(xp, prepared["wl"], prepared["bl"], relu=False)
    return (h + skip).astype(out_dtype)


# ---------------------------------------------------------------------------
# Parameter prep + forward wrapper
# ---------------------------------------------------------------------------
def prepare_params(params, hidden_dim, mxu_dtype=jnp.bfloat16):
    """One-time prep: transpose PyTorch (out,in) weights to (in,out), zero-pad
    to Hp = ceil(H/128)*128 (lane-dense), cast weights to the MXU feed dtype
    (default bf16: native on v6e/v7x, halves resident VMEM and weight DMA).
    Biases stay f32."""
    Hp = _round_up(hidden_dim, 128)
    pad = Hp - hidden_dim

    def prep_w(w):
        wt = jnp.asarray(w, jnp.float32).T                 # (in, out)
        wt = jnp.pad(wt, ((0, pad), (0, pad)))
        return wt.astype(mxu_dtype)

    def prep_b(b):
        b = jnp.pad(jnp.asarray(b, jnp.float32), (0, pad))
        return b.reshape(1, Hp)

    return {
        "w1": prep_w(params["w1"]), "b1": prep_b(params["b1"]),
        "w2": prep_w(params["w2"]), "b2": prep_b(params["b2"]),
        "w3": prep_w(params["w3"]), "b3": prep_b(params["b3"]),
        "wl": prep_w(params["wl"]), "bl": prep_b(params["bl"]),
    }


def _fc_forward_impl(x, prepared, tile_b, force_streaming, single_buffer_weights):
    B, H = x.shape
    Hp = prepared["w1"].shape[0]
    w_bytes = prepared["w1"].dtype.itemsize
    io_bytes = x.dtype.itemsize

    budget = _vmem_budget_bytes()
    slack = 8 << 20  # Mosaic internal scratch / misc headroom
    w_copies = 1 if single_buffer_weights else 2
    resident = w_copies * 4 * Hp * (Hp * w_bytes + 4)
    # Per batch-row VMEM in the fused kernel: double-buffered x & o tiles plus
    # ~4 live f32 (TILE_B, Hp) values (h, skip, MXU-feed casts).
    per_row = Hp * (2 * 2 * io_bytes + 4 * 4)

    target = 512 if tile_b is None else int(tile_b)
    use_streaming = force_streaming or (resident + 8 * per_row + slack > budget)

    if use_streaming:
        # Large-H fallback: stream weight panels, re-reading the (much smaller)
        # activations instead of keeping 4 HxH weights resident.
        TILE_B, Bp, _ = _choose_tile_b(B, min(target, 512))
        xp = jnp.pad(x, ((0, Bp - B), (0, Hp - H)))
        out = _fc_streaming(xp, prepared, tm=TILE_B, out_dtype=x.dtype)
        return out[:B, :H]

    # Fused path: cap TILE_B so resident weights + IO + intermediates fit VMEM.
    rows_fit = int((budget - resident - slack) // per_row)
    tile_cap = max(8, (rows_fit // 8) * 8)
    TILE_B, Bp, _ = _choose_tile_b(B, min(target, tile_cap))
    xp = jnp.pad(x, ((0, Bp - B), (0, Hp - H)))

    if single_buffer_weights:
        # Constant index_map -> one resident copy is enough; avoids doubling the
        # 4*Hp^2 weight footprint via the default double-buffering.
        w_spec = pl.BlockSpec((Hp, Hp), lambda i: (0, 0),
                              pipeline_mode=pl.Buffered(buffer_count=1))
        b_spec = pl.BlockSpec((1, Hp), lambda i: (0, 0),
                              pipeline_mode=pl.Buffered(buffer_count=1))
    else:
        w_spec = pl.BlockSpec((Hp, Hp), lambda i: (0, 0))
        b_spec = pl.BlockSpec((1, Hp), lambda i: (0, 0))
    x_spec = pl.BlockSpec((TILE_B, Hp), lambda i: (i, 0))
    o_spec = pl.BlockSpec((TILE_B, Hp), lambda i: (i, 0))

    need = resident + 2 * 2 * TILE_B * Hp * io_bytes + 4 * TILE_B * Hp * 4 + slack
    vmem_limit = int(min(max(need, 32 << 20), budget))

    out = pl.pallas_call(
        fc_kernel,
        out_shape=jax.ShapeDtypeStruct((Bp, Hp), x.dtype),
        grid=(Bp // TILE_B,),
        in_specs=[x_spec,
                  w_spec, b_spec,
                  w_spec, b_spec,
                  w_spec, b_spec,
                  w_spec, b_spec],
        out_specs=o_spec,
        compiler_params=pltpu.CompilerParams(
            dimension_semantics=("parallel",),
            vmem_limit_bytes=vmem_limit,
        ),
        cost_estimate=_cost_estimate(
            flops=8 * Bp * Hp * Hp,
            bytes_accessed=4 * Hp * Hp * w_bytes + 4 * Hp * 4
                           + 2 * Bp * Hp * io_bytes),
    )(xp,
      prepared["w1"], prepared["b1"],
      prepared["w2"], prepared["b2"],
      prepared["w3"], prepared["b3"],
      prepared["wl"], prepared["bl"])

    return out[:B, :H]


_fc_forward_jit = jax.jit(
    _fc_forward_impl,
    static_argnames=("tile_b", "force_streaming", "single_buffer_weights"))

_single_buffer_ok = True  # flipped off if pl.Buffered(1) is unsupported here


def fc_forward(x, prepared, hidden_dim=None, tile_b=None, force_streaming=False):
    """x: [B, H] float array. prepared: output of prepare_params(). Returns [B, H]
    in x.dtype (feed bf16 x for bf16 activation IO; accumulation stays f32)."""
    global _single_buffer_ok
    del hidden_dim  # inferred from shapes
    if _single_buffer_ok:
        try:
            return _fc_forward_jit(x, prepared, tile_b=tile_b,
                                   force_streaming=force_streaming,
                                   single_buffer_weights=True)
        except Exception:
            # Single-buffered resident weights not supported by this JAX build;
            # fall back to default (double-buffered) pipelining.
            _single_buffer_ok = False
    return _fc_forward_jit(x, prepared, tile_b=tile_b,
                           force_streaming=force_streaming,
                           single_buffer_weights=False)


# ---------------------------------------------------------------------------
# Reference / init / test
# ---------------------------------------------------------------------------
def init_params(key, hidden_dim):
    """Deterministic init mimicking nn.Linear's U(-1/sqrt(in), 1/sqrt(in)),
    stored PyTorch-style as (out_features, in_features) + (out_features,)."""
    bound = 1.0 / jnp.sqrt(hidden_dim)
    keys = jax.random.split(key, 8)

    def u(k, shape):
        return jax.random.uniform(k, shape, jnp.float32, -bound, bound)

    return {
        "w1": u(keys[0], (hidden_dim, hidden_dim)), "b1": u(keys[1], (hidden_dim,)),
        "w2": u(keys[2], (hidden_dim, hidden_dim)), "b2": u(keys[3], (hidden_dim,)),
        "w3": u(keys[4], (hidden_dim, hidden_dim)), "b3": u(keys[5], (hidden_dim,)),
        "wl": u(keys[6], (hidden_dim, hidden_dim)), "bl": u(keys[7], (hidden_dim,)),
    }


def fc_reference(x, p):
    """Pure-JAX reference matching PyTorch FC.forward semantics."""
    def lin(v, w, b):
        return v @ w.T + b
    h = jax.nn.relu(lin(x, p["w1"], p["b1"]))
    h = jax.nn.relu(lin(h, p["w2"], p["b2"]))
    h = jax.nn.relu(lin(h, p["w3"], p["b3"]))
    return h + lin(x, p["wl"], p["bl"])


if __name__ == "__main__":
    key = jax.random.PRNGKey(0)
    k_x, k_p = jax.random.split(key)

    B, H = 8, 32  # small batch, hidden_dim=32 (padded to 128 lanes internally)
    x = jax.random.normal(k_x, (B, H), jnp.float32)
    params = init_params(k_p, H)
    ref = fc_reference(x, params)

    # 1) f32 MXU feed: bit-for-bit close to the f32 reference.
    prep_f32 = prepare_params(params, H, mxu_dtype=jnp.float32)
    out_f32 = jax.block_until_ready(fc_forward(x, prep_f32, hidden_dim=H))
    assert out_f32.shape == (B, H)
    assert jnp.allclose(out_f32, ref, atol=1e-5, rtol=1e-5), "f32 mismatch vs reference"

    # 2) default bf16 MXU feed (v6e/v7x fast path), f32 accumulate.
    prep_bf16 = prepare_params(params, H)
    out_bf16 = jax.block_until_ready(fc_forward(x, prep_bf16, hidden_dim=H))
    assert out_bf16.shape == (B, H)
    assert jnp.allclose(out_bf16, ref, atol=3e-2, rtol=3e-2), "bf16 mismatch vs reference"

    # 3) multi-step batch grid: exercises adaptive TILE_B, tight padding and the
    #    >=2-grid-step rule (both v7x TensorCores get work).
    B2 = 40
    x2 = jax.random.normal(k_x, (B2, H), jnp.float32)
    ref2 = fc_reference(x2, params)
    out2 = jax.block_until_ready(fc_forward(x2, prep_bf16, hidden_dim=H))
    assert out2.shape == (B2, H)
    assert jnp.allclose(out2, ref2, atol=3e-2, rtol=3e-2), "multi-tile mismatch vs reference"

    # 4) forced weight-streaming path (large-H fallback), validated at small shape.
    out_s = jax.block_until_ready(
        fc_forward(x, prep_bf16, hidden_dim=H, force_streaming=True))
    assert out_s.shape == (B, H)
    assert jnp.allclose(out_s, ref, atol=3e-2, rtol=3e-2), "streaming mismatch vs reference"

    print("KERNEL_OK")
</pallas_src>

<mosaic_0001>
module attributes {stable_mosaic.version = 11 : i64} {
  func.func @fc_kernel(%arg0: i32, %arg1: memref<8x128xf32, #tpu.memory_space<vmem>>, %arg2: memref<128x128xf32, #tpu.memory_space<vmem>>, %arg3: memref<1x128xf32, #tpu.memory_space<vmem>>, %arg4: memref<128x128xf32, #tpu.memory_space<vmem>>, %arg5: memref<1x128xf32, #tpu.memory_space<vmem>>, %arg6: memref<128x128xf32, #tpu.memory_space<vmem>>, %arg7: memref<1x128xf32, #tpu.memory_space<vmem>>, %arg8: memref<128x128xf32, #tpu.memory_space<vmem>>, %arg9: memref<1x128xf32, #tpu.memory_space<vmem>>, %arg10: memref<8x128xf32, #tpu.memory_space<vmem>>) attributes {dimension_semantics = [#tpu.dimension_semantics<parallel>], iteration_bounds = array<i64: 1>, scalar_prefetch = 0 : i64, scratch_operands = 0 : i64, tpu.core_type = #tpu.core_type<tc>, window_params = [{transform_indices = @transform_0, window_bounds = array<i64: 8, 128>}, {pipeline_mode = #tpu.pipeline_mode<synchronous>, transform_indices = @transform_1, window_bounds = array<i64: 128, 128>}, {pipeline_mode = #tpu.pipeline_mode<synchronous>, transform_indices = @transform_2, window_bounds = array<i64: 1, 128>}, {pipeline_mode = #tpu.pipeline_mode<synchronous>, transform_indices = @transform_3, window_bounds = array<i64: 128, 128>}, {pipeline_mode = #tpu.pipeline_mode<synchronous>, transform_indices = @transform_4, window_bounds = array<i64: 1, 128>}, {pipeline_mode = #tpu.pipeline_mode<synchronous>, transform_indices = @transform_5, window_bounds = array<i64: 128, 128>}, {pipeline_mode = #tpu.pipeline_mode<synchronous>, transform_indices = @transform_6, window_bounds = array<i64: 1, 128>}, {pipeline_mode = #tpu.pipeline_mode<synchronous>, transform_indices = @transform_7, window_bounds = array<i64: 128, 128>}, {pipeline_mode = #tpu.pipeline_mode<synchronous>, transform_indices = @transform_8, window_bounds = array<i64: 1, 128>}, {transform_indices = @transform_9, window_bounds = array<i64: 8, 128>}]} {
    %c0 = arith.constant 0 : index
    %c0_0 = arith.constant 0 : index
    %0 = vector.load %arg1[%c0, %c0_0] : memref<8x128xf32, #tpu.memory_space<vmem>>, vector<8x128xf32>
    %c0_1 = arith.constant 0 : index
    %c0_2 = arith.constant 0 : index
    %1 = vector.load %arg2[%c0_1, %c0_2] : memref<128x128xf32, #tpu.memory_space<vmem>>, vector<128x128xf32>
    %cst = arith.constant dense<0.000000e+00> : vector<8x128xf32>
    %2 = tpu.matmul %0, %1, %cst {dimension_numbers = #tpu.dot_dimension_numbers<[1], [0], [0], [1], [0, 0, 1, 1], [], []>} : vector<8x128xf32>, vector<128x128xf32>, vector<8x128xf32> -> vector<8x128xf32>
    %c0_3 = arith.constant 0 : index
    %c0_4 = arith.constant 0 : index
    %3 = vector.load %arg3[%c0_3, %c0_4] : memref<1x128xf32, #tpu.memory_space<vmem>>, vector<1x128xf32>
    %4 = vector.broadcast %3 : vector<1x128xf32> to vector<8x128xf32>
    %5 = arith.addf %2, %4 : vector<8x128xf32>
    %cst_5 = arith.constant 0.000000e+00 : f32
    %6 = vector.broadcast %cst_5 : f32 to vector<8x128xf32>
    %7 = arith.maximumf %5, %6 : vector<8x128xf32>
    %c0_6 = arith.constant 0 : index
    %c0_7 = arith.constant 0 : index
    %8 = vector.load %arg4[%c0_6, %c0_7] : memref<128x128xf32, #tpu.memory_space<vmem>>, vector<128x128xf32>
    %cst_8 = arith.constant dense<0.000000e+00> : vector<8x128xf32>
    %9 = tpu.matmul %7, %8, %cst_8 {dimension_numbers = #tpu.dot_dimension_numbers<[1], [0], [0], [1], [0, 0, 1, 1], [], []>} : vector<8x128xf32>, vector<128x128xf32>, vector<8x128xf32> -> vector<8x128xf32>
    %c0_9 = arith.constant 0 : index
    %c0_10 = arith.constant 0 : index
    %10 = vector.load %arg5[%c0_9, %c0_10] : memref<1x128xf32, #tpu.memory_space<vmem>>, vector<1x128xf32>
    %11 = vector.broadcast %10 : vector<1x128xf32> to vector<8x128xf32>
    %12 = arith.addf %9, %11 : vector<8x128xf32>
    %cst_11 = arith.constant 0.000000e+00 : f32
    %13 = vector.broadcast %cst_11 : f32 to vector<8x128xf32>
    %14 = arith.maximumf %12, %13 : vector<8x128xf32>
    %c0_12 = arith.constant 0 : index
    %c0_13 = arith.constant 0 : index
    %15 = vector.load %arg6[%c0_12, %c0_13] : memref<128x128xf32, #tpu.memory_space<vmem>>, vector<128x128xf32>
    %cst_14 = arith.constant dense<0.000000e+00> : vector<8x128xf32>
    %16 = tpu.matmul %14, %15, %cst_14 {dimension_numbers = #tpu.dot_dimension_numbers<[1], [0], [0], [1], [0, 0, 1, 1], [], []>} : vector<8x128xf32>, vector<128x128xf32>, vector<8x128xf32> -> vector<8x128xf32>
    %c0_15 = arith.constant 0 : index
    %c0_16 = arith.constant 0 : index
    %17 = vector.load %arg7[%c0_15, %c0_16] : memref<1x128xf32, #tpu.memory_space<vmem>>, vector<1x128xf32>
    %18 = vector.broadcast %17 : vector<1x128xf32> to vector<8x128xf32>
    %19 = arith.addf %16, %18 : vector<8x128xf32>
    %cst_17 = arith.constant 0.000000e+00 : f32
    %20 = vector.broadcast %cst_17 : f32 to vector<8x128xf32>
    %21 = arith.maximumf %19, %20 : vector<8x128xf32>
    %c0_18 = arith.constant 0 : index
    %c0_19 = arith.constant 0 : index
    %22 = vector.load %arg8[%c0_18, %c0_19] : memref<128x128xf32, #tpu.memory_space<vmem>>, vector<128x128xf32>
    %cst_20 = arith.constant dense<0.000000e+00> : vector<8x128xf32>
    %23 = tpu.matmul %0, %22, %cst_20 {dimension_numbers = #tpu.dot_dimension_numbers<[1], [0], [0], [1], [0, 0, 1, 1], [], []>} : vector<8x128xf32>, vector<128x128xf32>, vector<8x128xf32> -> vector<8x128xf32>
    %c0_21 = arith.constant 0 : index
    %c0_22 = arith.constant 0 : index
    %24 = vector.load %arg9[%c0_21, %c0_22] : memref<1x128xf32, #tpu.memory_space<vmem>>, vector<1x128xf32>
    %25 = vector.broadcast %24 : vector<1x128xf32> to vector<8x128xf32>
    %26 = arith.addf %23, %25 : vector<8x128xf32>
    %27 = arith.addf %21, %26 : vector<8x128xf32>
    %c0_23 = arith.constant 0 : index
    %c0_24 = arith.constant 0 : index
    %28 = vector.load %arg10[%c0_23, %c0_24] : memref<8x128xf32, #tpu.memory_space<vmem>>, vector<8x128xf32>
    tpu.vector_store %arg10[%c0_23, %c0_24], %27 {strides = array<i32>} : memref<8x128xf32, #tpu.memory_space<vmem>>, vector<8x128xf32>,
    return
  }
  func.func @transform_0(%arg0: i32) -> (i32, i32) {
    %c0_i32 = arith.constant 0 : i32
    %c0_i32_0 = arith.constant 0 : i32
    return %arg0, %c0_i32 : i32, i32
  }
  func.func @transform_1(%arg0: i32) -> (i32, i32) {
    %c0_i32 = arith.constant 0 : i32
    %c0_i32_0 = arith.constant 0 : i32
    %c0_i32_1 = arith.constant 0 : i32
    return %c0_i32, %c0_i32_0 : i32, i32
  }
  func.func @transform_2(%arg0: i32) -> (i32, i32) {
    %c0_i32 = arith.constant 0 : i32
    %c0_i32_0 = arith.constant 0 : i32
    %c0_i32_1 = arith.constant 0 : i32
    return %c0_i32, %c0_i32_0 : i32, i32
  }
  func.func @transform_3(%arg0: i32) -> (i32, i32) {
    %c0_i32 = arith.constant 0 : i32
    %c0_i32_0 = arith.constant 0 : i32
    %c0_i32_1 = arith.constant 0 : i32
    return %c0_i32, %c0_i32_0 : i32, i32
  }
  func.func @transform_4(%arg0: i32) -> (i32, i32) {
    %c0_i32 = arith.constant 0 : i32
    %c0_i32_0 = arith.constant 0 : i32
    %c0_i32_1 = arith.constant 0 : i32
    return %c0_i32, %c0_i32_0 : i32, i32
  }
  func.func @transform_5(%arg0: i32) -> (i32, i32) {
    %c0_i32 = arith.constant 0 : i32
    %c0_i32_0 = arith.constant 0 : i32
    %c0_i32_1 = arith.constant 0 : i32
    return %c0_i32, %c0_i32_0 : i32, i32
  }
  func.func @transform_6(%arg0: i32) -> (i32, i32) {
    %c0_i32 = arith.constant 0 : i32
    %c0_i32_0 = arith.constant 0 : i32
    %c0_i32_1 = arith.constant 0 : i32
    return %c0_i32, %c0_i32_0 : i32, i32
  }
  func.func @transform_7(%arg0: i32) -> (i32, i32) {
    %c0_i32 = arith.constant 0 : i32
    %c0_i32_0 = arith.constant 0 : i32
    %c0_i32_1 = arith.constant 0 : i32
    return %c0_i32, %c0_i32_0 : i32, i32
  }
  func.func @transform_8(%arg0: i32) -> (i32, i32) {
    %c0_i32 = arith.constant 0 : i32
    %c0_i32_0 = arith.constant 0 : i32
    %c0_i32_1 = arith.constant 0 : i32
    return %c0_i32, %c0_i32_0 : i32, i32
  }
  func.func @transform_9(%arg0: i32) -> (i32, i32) {
    %c0_i32 = arith.constant 0 : i32
    %c0_i32_0 = arith.constant 0 : i32
    return %arg0, %c0_i32 : i32, i32
  }
}

module attributes {stable_mosaic.version = 11 : i64} {
  func.func @fc_kernel(%arg0: i32, %arg1: memref<8x128xf32, #tpu.memory_space<vmem>>, %arg2: memref<128x128xf32, #tpu.memory_space<vmem>>, %arg3: memref<1x128xf32, #tpu.memory_space<vmem>>, %arg4: memref<128x128xf32, #tpu.memory_space<vmem>>, %arg5: memref<1x128xf32, #tpu.memory_space<vmem>>, %arg6: memref<128x128xf32, #tpu.memory_space<vmem>>, %arg7: memref<1x128xf32, #tpu.memory_space<vmem>>, %arg8: memref<128x128xf32, #tpu.memory_space<vmem>>, %arg9: memref<1x128xf32, #tpu.memory_space<vmem>>, %arg10: memref<8x128xf32, #tpu.memory_space<vmem>>) attributes {dimension_semantics = [#tpu.dimension_semantics<parallel>], iteration_bounds = array<i64: 1>, scalar_prefetch = 0 : i64, scratch_operands = 0 : i64, tpu.core_type = #tpu.core_type<tc>, window_params = [{transform_indices = @transform_0, window_bounds = array<i64: 8, 128>}, {pipeline_mode = #tpu.pipeline_mode<synchronous>, transform_indices = @transform_1, window_bounds = array<i64: 128, 128>}, {pipeline_mode = #tpu.pipeline_mode<synchronous>, transform_indices = @transform_2, window_bounds = array<i64: 1, 128>}, {pipeline_mode = #tpu.pipeline_mode<synchronous>, transform_indices = @transform_3, window_bounds = array<i64: 128, 128>}, {pipeline_mode = #tpu.pipeline_mode<synchronous>, transform_indices = @transform_4, window_bounds = array<i64: 1, 128>}, {pipeline_mode = #tpu.pipeline_mode<synchronous>, transform_indices = @transform_5, window_bounds = array<i64: 128, 128>}, {pipeline_mode = #tpu.pipeline_mode<synchronous>, transform_indices = @transform_6, window_bounds = array<i64: 1, 128>}, {pipeline_mode = #tpu.pipeline_mode<synchronous>, transform_indices = @transform_7, window_bounds = array<i64: 128, 128>}, {pipeline_mode = #tpu.pipeline_mode<synchronous>, transform_indices = @transform_8, window_bounds = array<i64: 1, 128>}, {transform_indices = @transform_9, window_bounds = array<i64: 8, 128>}]} {
    %c0 = arith.constant 0 : index
    %c0_0 = arith.constant 0 : index
    %0 = vector.load %arg1[%c0, %c0_0] : memref<8x128xf32, #tpu.memory_space<vmem>>, vector<8x128xf32>
    %c0_1 = arith.constant 0 : index
    %c0_2 = arith.constant 0 : index
    %1 = vector.load %arg2[%c0_1, %c0_2] : memref<128x128xf32, #tpu.memory_space<vmem>>, vector<128x128xf32>
    %cst = arith.constant dense<0.000000e+00> : vector<8x128xf32>
    %2 = tpu.matmul %0, %1, %cst {dimension_numbers = #tpu.dot_dimension_numbers<[1], [0], [0], [1], [0, 0, 1, 1], [], []>} : vector<8x128xf32>, vector<128x128xf32>, vector<8x128xf32> -> vector<8x128xf32>
    %c0_3 = arith.constant 0 : index
    %c0_4 = arith.constant 0 : index
    %3 = vector.load %arg3[%c0_3, %c0_4] : memref<1x128xf32, #tpu.memory_space<vmem>>, vector<1x128xf32>
    %4 = vector.broadcast %3 : vector<1x128xf32> to vector<8x128xf32>
    %5 = arith.addf %2, %4 : vector<8x128xf32>
    %cst_5 = arith.constant 0.000000e+00 : f32
    %6 = vector.broadcast %cst_5 : f32 to vector<8x128xf32>
    %7 = arith.maximumf %5, %6 : vector<8x128xf32>
    %c0_6 = arith.constant 0 : index
    %c0_7 = arith.constant 0 : index
    %8 = vector.load %arg4[%c0_6, %c0_7] : memref<128x128xf32, #tpu.memory_space<vmem>>, vector<128x128xf32>
    %cst_8 = arith.constant dense<0.000000e+00> : vector<8x128xf32>
    %9 = tpu.matmul %7, %8, %cst_8 {dimension_numbers = #tpu.dot_dimension_numbers<[1], [0], [0], [1], [0, 0, 1, 1], [], []>} : vector<8x128xf32>, vector<128x128xf32>, vector<8x128xf32> -> vector<8x128xf32>
    %c0_9 = arith.constant 0 : index
    %c0_10 = arith.constant 0 : index
    %10 = vector.load %arg5[%c0_9, %c0_10] : memref<1x128xf32, #tpu.memory_space<vmem>>, vector<1x128xf32>
    %11 = vector.broadcast %10 : vector<1x128xf32> to vector<8x128xf32>
    %12 = arith.addf %9, %11 : vector<8x128xf32>
    %cst_11 = arith.constant 0.000000e+00 : f32
    %13 = vector.broadcast %cst_11 : f32 to vector<8x128xf32>
    %14 = arith.maximumf %12, %13 : vector<8x128xf32>
    %c0_12 = arith.constant 0 : index
    %c0_13 = arith.constant 0 : index
    %15 = vector.load %arg6[%c0_12, %c0_13] : memref<128x128xf32, #tpu.memory_space<vmem>>, vector<128x128xf32>
    %cst_14 = arith.constant dense<0.000000e+00> : vector<8x128xf32>
    %16 = tpu.matmul %14, %15, %cst_14 {dimension_numbers = #tpu.dot_dimension_numbers<[1], [0], [0], [1], [0, 0, 1, 1], [], []>} : vector<8x128xf32>, vector<128x128xf32>, vector<8x128xf32> -> vector<8x128xf32>
    %c0_15 = arith.constant 0 : index
    %c0_16 = arith.constant 0 : index
    %17 = vector.load %arg7[%c0_15, %c0_16] : memref<1x128xf32, #tpu.memory_space<vmem>>, vector<1x128xf32>
    %18 = vector.broadcast %17 : vector<1x128xf32> to vector<8x128xf32>
    %19 = arith.addf %16, %18 : vector<8x128xf32>
    %cst_17 = arith.constant 0.000000e+00 : f32
    %20 = vector.broadcast %cst_17 : f32 to vector<8x128xf32>
    %21 = arith.maximumf %19, %20 : vector<8x128xf32>
    %c0_18 = arith.constant 0 : index
    %c0_19 = arith.constant 0 : index
    %22 = vector.load %arg8[%c0_18, %c0_19] : memref<128x128xf32, #tpu.memory_space<vmem>>, vector<128x128xf32>
    %cst_20 = arith.constant dense<0.000000e+00> : vector<8x128xf32>
    %23 = tpu.matmul %0, %22, %cst_20 {dimension_numbers = #tpu.dot_dimension_numbers<[1], [0], [0], [1], [0, 0, 1, 1], [], []>} : vector<8x128xf32>, vector<128x128xf32>, vector<8x128xf32> -> vector<8x128xf32>
    %c0_21 = arith.constant 0 : index
    %c0_22 = arith.constant 0 : index
    %24 = vector.load %arg9[%c0_21, %c0_22] : memref<1x128xf32, #tpu.memory_space<vmem>>, vector<1x128xf32>
    %25 = vector.broadcast %24 : vector<1x128xf32> to vector<8x128xf32>
    %26 = arith.addf %23, %25 : vector<8x128xf32>
    %27 = arith.addf %21, %26 : vector<8x128xf32>
    %c0_23 = arith.constant 0 : index
    %c0_24 = arith.constant 0 : index
    %28 = vector.load %arg10[%c0_23, %c0_24] : memref<8x128xf32, #tpu.memory_space<vmem>>, vector<8x128xf32>
    tpu.vector_store %arg10[%c0_23, %c0_24], %27 {strides = array<i32>} : memref<8x128xf32, #tpu.memory_space<vmem>>, vector<8x128xf32>,
    return
  }
  func.func @transform_0(%arg0: i32) -> (i32, i32) {
    %c0_i32 = arith.constant 0 : i32
    %c0_i32_0 = arith.constant 0 : i32
    return %arg0, %c0_i32 : i32, i32
  }
  func.func @transform_1(%arg0: i32) -> (i32, i32) {
    %c0_i32 = arith.constant 0 : i32
    %c0_i32_0 = arith.constant 0 : i32
    %c0_i32_1 = arith.constant 0 : i32
    return %c0_i32, %c0_i32_0 : i32, i32
  }
  func.func @transform_2(%arg0: i32) -> (i32, i32) {
    %c0_i32 = arith.constant 0 : i32
    %c0_i32_0 = arith.constant 0 : i32
    %c0_i32_1 = arith.constant 0 : i32
    return %c0_i32, %c0_i32_0 : i32, i32
  }
  func.func @transform_3(%arg0: i32) -> (i32, i32) {
    %c0_i32 = arith.constant 0 : i32
    %c0_i32_0 = arith.constant 0 : i32
    %c0_i32_1 = arith.constant 0 : i32
    return %c0_i32, %c0_i32_0 : i32, i32
  }
  func.func @transform_4(%arg0: i32) -> (i32, i32) {
    %c0_i32 = arith.constant 0 : i32
    %c0_i32_0 = arith.constant 0 : i32
    %c0_i32_1 = arith.constant 0 : i32
    return %c0_i32, %c0_i32_0 : i32, i32
  }
  func.func @transform_5(%arg0: i32) -> (i32, i32) {
    %c0_i32 = arith.constant 0 : i32
    %c0_i32_0 = arith.constant 0 : i32
    %c0_i32_1 = arith.constant 0 : i32
    return %c0_i32, %c0_i32_0 : i32, i32
  }
  func.func @transform_6(%arg0: i32) -> (i32, i32) {
    %c0_i32 = arith.constant 0 : i32
    %c0_i32_0 = arith.constant 0 : i32
    %c0_i32_1 = arith.constant 0 : i32
    return %c0_i32, %c0_i32_0 : i32, i32
  }
  func.func @transform_7(%arg0: i32) -> (i32, i32) {
    %c0_i32 = arith.constant 0 : i32
    %c0_i32_0 = arith.constant 0 : i32
    %c0_i32_1 = arith.constant 0 : i32
    return %c0_i32, %c0_i32_0 : i32, i32
  }
  func.func @transform_8(%arg0: i32) -> (i32, i32) {
    %c0_i32 = arith.constant 0 : i32
    %c0_i32_0 = arith.constant 0 : i32
    %c0_i32_1 = arith.constant 0 : i32
    return %c0_i32, %c0_i32_0 : i32, i32
  }
  func.func @transform_9(%arg0: i32) -> (i32, i32) {
    %c0_i32 = arith.constant 0 : i32
    %c0_i32_0 = arith.constant 0 : i32
    return %arg0, %c0_i32 : i32, i32
  }
}

</mosaic_0001>

<bundles_post_ra>
// kernel: _fc_forward_impl.1
= control target key start
LH: loop header
LB: loop body
LE: loop exit
PB: predicated region body
PF: predicated region fallthrough
CT: control target
= control target key end

     0   :  { %14 = vsyncpa [#allocation3], 0  ;;  %s1124_s0 = inlined_call_operand.vmem [shape: f32[8,128], index: 0, kind: input, shape index: {}]   ;;  %s1125_s1 = inlined_call_operand.hbm [shape: f32[128,128], index: 1, kind: input, shape index: {}]   ;;  %s1126_s2 = inlined_call_operand.vmem [shape: f32[1,128], index: 2, kind: input, shape index: {}]   ;;  %s1127_s3 = inlined_call_operand.hbm [shape: f32[128,128], index: 3, kind: input, shape index: {}]   ;;  %s1128_s4 = inlined_call_operand.vmem [shape: f32[1,128], index: 4, kind: input, shape index: {}]   ;;  %s1129_s5 = inlined_call_operand.hbm [shape: f32[128,128], index: 5, kind: input, shape index: {}]   ;;  %s1130_s6 = inlined_call_operand.vmem [shape: f32[1,128], index: 6, kind: input, shape index: {}]   ;;  %s1131_s7 = inlined_call_operand.hbm [shape: f32[128,128], index: 7, kind: input, shape index: {}]   ;;  %s1132_s8 = inlined_call_operand.vmem [shape: f32[1,128], index: 8, kind: input, shape index: {}]   ;;  %s1133_s9 = inlined_call_operand.hbm [shape: f32[8,128], index: 9, kind: output, shape index: {}]  }
   0x1   :  { %15 = vsyncpa [#allocation6], 0 }
   0x2   :  { %16 = vsyncpa [#allocation9], 0 }
   0x3   :  { %17 = vsyncpa [#allocation4], 0  ;;  %s919_s30 = smov [#allocation5]   ;;  %s920_s11 = smov [#allocation2]  }
   0x4   :  { %s39_s10 = sshll.u32 %s919_s30, 4  ;;  %s25_s12 = sshll.u32 %s920_s11, 4  ;;  %s40_s10 = int_to_ptr.vmem [resolvable:$true] %s39_s10  ;;  %s979_s12 = int_to_ptr.vmem [resolvable:$true] %s25_s12 }
   0x5   :  { %s801_s15 = scalar_lea.hbm %s1127_s3, 2048 }
   0x6   :  { %p802_p0 = scmp.ne.s32.totalorder %s1127_s3, %s801_s15  ;;  %p805_p1 = scmp.lt.u32.totalorder %s801_s15, %s1127_s3 }
   0x8   :  { %p807_p2 = pnand %p805_p1, %p802_p0 }
   0xa   :  { %810 = shalt.err (!%p807_p2)
}
   0xb   :  { %s811_s20 = scalar_lea.vmem %s40_s10, 2048  ;;  %p816_p4 = scmp.lt.s32.totalorder %s40_s10, %s40_s10 }
   0xc   :  { %p812_p3 = scmp.ne.s32.totalorder %s40_s10, %s811_s20  ;;  %p817_p5 = scmp.lt.s32.totalorder %s811_s20, %s811_s20 }
   0xe   :  { %p818_p6 = por %p817_p5, %p816_p4 }
  0x10   :  { %p819_p7 = pnand %p818_p6, %p812_p3 }
  0x12   :  { %822 = shalt.err (!%p819_p7)
}
  0x13   :  { %s921_s21 = smov 128   ;;  %s922_s22 = smov 8  }
  0x14   :  { %45 = dma.hbm_to_vmem [thread:$0]  %s1127_s3, 2048, %s40_s10, [#allocation6], %s921_s21, %s921_s21, %s922_s22  }
  0x15   :  { %s823_s27 = scalar_lea.hbm %s1125_s1, 2048 }
  0x16   :  { %p824_p8 = scmp.ne.s32.totalorder %s1125_s1, %s823_s27  ;;  %p827_p9 = scmp.lt.u32.totalorder %s823_s27, %s1125_s1 }
  0x18   :  { %p829_p10 = pnand %p827_p9, %p824_p8 }
  0x1a   :  { %832 = shalt.err (!%p829_p10)
}
  0x1b   :  { %s833_s13 = scalar_lea.vmem %s979_s12, 2048  ;;  %p838_p12 = scmp.lt.s32.totalorder %s979_s12, %s979_s12 }
  0x1c   :  { %p834_p11 = scmp.ne.s32.totalorder %s979_s12, %s833_s13  ;;  %p839_p13 = scmp.lt.s32.totalorder %s833_s13, %s833_s13 }
  0x1e   :  { %p840_p0 = por %p839_p13, %p838_p12 }
  0x20   :  { %p841_p1 = pnand %p840_p0, %p834_p11 }
  0x22   :  { %844 = shalt.err (!%p841_p1)
}
  0x23   :  { %31 = dma.hbm_to_vmem [thread:$0]  %s1125_s1, 2048, %s979_s12, [#allocation3], %s921_s21, %s921_s21, %s922_s22  }
  0x24   :  { %s923_s14 = smov [#allocation7]   ;;  %s924_s16 = smov [#allocation8]  }
  0x25   :  { %s53_s15 = sshll.u32 %s923_s14, 4  ;;  %s67_s17 = sshll.u32 %s924_s16, 4  ;;  %s54_s15 = int_to_ptr.vmem [resolvable:$true] %s53_s15  ;;  %s1016_s17 = int_to_ptr.vmem [resolvable:$true] %s67_s17 }
  0x26   :  { %s845_s20 = scalar_lea.hbm %s1129_s5, 2048 }
  0x27   :  { %p846_p2 = scmp.ne.s32.totalorder %s1129_s5, %s845_s20  ;;  %p849_p3 = scmp.lt.u32.totalorder %s845_s20, %s1129_s5 }
  0x29   :  { %p851_p4 = pnand %p849_p3, %p846_p2 }
  0x2b   :  { %854 = shalt.err (!%p851_p4)
}
  0x2c   :  { %s855_s1 = scalar_lea.vmem %s54_s15, 2048  ;;  %p860_p6 = scmp.lt.s32.totalorder %s54_s15, %s54_s15 }
  0x2d   :  { %p856_p5 = scmp.ne.s32.totalorder %s54_s15, %s855_s1  ;;  %p861_p7 = scmp.lt.s32.totalorder %s855_s1, %s855_s1 }
  0x2f   :  { %p862_p8 = por %p861_p7, %p860_p6 }
  0x31   :  { %p863_p9 = pnand %p862_p8, %p856_p5 }
  0x33   :  { %866 = shalt.err (!%p863_p9)
}
  0x34   :  { %59 = dma.hbm_to_vmem [thread:$0]  %s1129_s5, 2048, %s54_s15, [#allocation6], %s921_s21, %s921_s21, %s922_s22  }
  0x35   :  { %s867_s30 = scalar_lea.hbm %s1131_s7, 2048 }
  0x36   :  { %p868_p10 = scmp.ne.s32.totalorder %s1131_s7, %s867_s30  ;;  %p871_p11 = scmp.lt.u32.totalorder %s867_s30, %s1131_s7 }
  0x38   :  { %p873_p12 = pnand %p871_p11, %p868_p10 }
  0x3a   :  { %876 = shalt.err (!%p873_p12)
}
  0x3b   :  { %s877_s14 = scalar_lea.vmem %s1016_s17, 2048  ;;  %p882_p0 = scmp.lt.s32.totalorder %s1016_s17, %s1016_s17 }
  0x3c   :  { %p878_p13 = scmp.ne.s32.totalorder %s1016_s17, %s877_s14  ;;  %p883_p1 = scmp.lt.s32.totalorder %s877_s14, %s877_s14 }
  0x3e   :  { %p884_p2 = por %p883_p1, %p882_p0 }
  0x40   :  { %p885_p3 = pnand %p884_p2, %p878_p13 }
  0x42   :  { %888 = shalt.err (!%p885_p3)
}
  0x43   :  { %73 = dma.hbm_to_vmem [thread:$0]  %s1131_s7, 2048, %s1016_s17, [#allocation9], %s921_s21, %s921_s21, %s922_s22  }
  0x44   :  { %911 = dma.done.wait [#allocation3], 2048  }
  0x45   :  { %912 = vsyncadd [#allocation3], 4294965248 }
  0x46   :  { %913 = dma.done.wait [#allocation6], 4096  }
  0x47   :  { %914 = vsyncadd [#allocation6], 4294963200 }
  0x48   :  { %915 = dma.done.wait [#allocation9], 2048  }
  0x49   :  { %916 = vsyncadd [#allocation9], 4294965248  ;;  %v925_v0 = vmov 0.0|0.0   ;;  %vm926_vm0 = vmmov 0   ;;  %v927_v1 = vmov 0.0   ;;  %v89_v2 = vld [vmem:[#allocation2] sm:$0xff] }
  0x4a   :  { %695 = vmatprep.subr.bf16.mxu0 %v925_v0  ;;  %587 = vmatprep.mubr.msk.f32.mxu0 %vm926_vm0, %v927_v1  ;;  %v90_v3 = vld [vmem:[#allocation2 + $0x8] sm:$0xff]  ;;  %v91_v4 = vld [vmem:[#allocation2 + $0x10] sm:$0xff]  ;;  %v92_v6 = vld [vmem:[#allocation2 + $0x18] sm:$0xff] }
  0x4b   :  { %719 = vmatprep.subr.bf16.mxu1 %v925_v0  ;;  %622 = vmatprep.mubr.msk.f32.mxu1 %vm926_vm0, %v927_v1  ;;  %v696_v5 = vpack.c.bf16 %v90_v3, %v89_v2  ;;  %v699_v7 = vpack.c.bf16 %v92_v6, %v91_v4  ;;  %v93_v8 = vld [vmem:[#allocation2 + $0x20] sm:$0xff]  ;;  %v94_v9 = vld [vmem:[#allocation2 + $0x28] sm:$0xff]  ;;  %v185_v12 = vld [vmem:[#allocation5 + $0x10] sm:$0xff] }
  0x4c   :  { %v183_v10 = vld [vmem:[#allocation5] sm:$0xff]  ;;  %v184_v11 = vld [vmem:[#allocation5 + $0x8] sm:$0xff]  ;;  %v186_v13 = vld [vmem:[#allocation5 + $0x18] sm:$0xff]  ;;  %v702_v14 = vpack.c.bf16 %v94_v9, %v93_v8 }
  0x4d   :  { %697 = vmatpush3.bf16.msra.mxu0 %v696_v5  ;;  %v720_v15 = vpack.c.bf16 %v184_v11, %v183_v10  ;;  %v95_v16 = vld [vmem:[#allocation2 + $0x30] sm:$0xff]  ;;  %v96_v17 = vld [vmem:[#allocation2 + $0x38] sm:$0xff]  ;;  %v723_v18 = vpack.c.bf16 %v186_v13, %v185_v12  ;;  %v187_v19 = vld [vmem:[#allocation5 + $0x20] sm:$0xff] }
  0x4e   :  { %698 = vmatprep.subr.bf16.mxu0 %v925_v0  ;;  %v188_v20 = vld [vmem:[#allocation5 + $0x28] sm:$0xff]  ;;  %v705_v21 = vpack.c.bf16 %v96_v17, %v95_v16  ;;  %v97_v22 = vld [vmem:[#allocation2 + $0x40] sm:$0xff]  ;;  %v189_v25 = vld [vmem:[#allocation5 + $0x30] sm:$0xff] }
  0x4f   :  { %721 = vmatpush3.bf16.msra.mxu1 %v720_v15  ;;  %v98_v23 = vld [vmem:[#allocation2 + $0x48] sm:$0xff]  ;;  %v726_v24 = vpack.c.bf16 %v188_v20, %v187_v19  ;;  %v190_v26 = vld [vmem:[#allocation5 + $0x38] sm:$0xff]  ;;  %v99_v28 = vld [vmem:[#allocation2 + $0x50] sm:$0xff] }
  0x50   :  { %722 = vmatprep.subr.bf16.mxu1 %v925_v0  ;;  %v708_v27 = vpack.c.bf16 %v98_v23, %v97_v22  ;;  %v100_v29 = vld [vmem:[#allocation2 + $0x58] sm:$0xff]  ;;  %v729_v30 = vpack.c.bf16 %v190_v26, %v189_v25  ;;  %v191_v31 = vld [vmem:[#allocation5 + $0x40] sm:$0xff]  ;;  %v192_v32 = vld [vmem:[#allocation5 + $0x48] sm:$0xff] }
  0x51   :  { %700 = vmatpush3.bf16.msra.mxu0 %v699_v7  ;;  %v711_v33 = vpack.c.bf16 %v100_v29, %v99_v28  ;;  %v101_v34 = vld [vmem:[#allocation2 + $0x60] sm:$0xff]  ;;  %v102_v35 = vld [vmem:[#allocation2 + $0x68] sm:$0xff]  ;;  %v732_v36 = vpack.c.bf16 %v192_v32, %v191_v31  ;;  %v193_v37 = vld [vmem:[#allocation5 + $0x50] sm:$0xff] }
  0x52   :  { %701 = vmatprep.subr.bf16.mxu0 %v925_v0  ;;  %v194_v38 = vld [vmem:[#allocation5 + $0x58] sm:$0xff]  ;;  %v714_v39 = vpack.c.bf16 %v102_v35, %v101_v34  ;;  %v103_v40 = vld [vmem:[#allocation2 + $0x70] sm:$0xff]  ;;  %v195_v43 = vld [vmem:[#allocation5 + $0x60] sm:$0xff] }
  0x53   :  { %724 = vmatpush3.bf16.msra.mxu1 %v723_v18  ;;  %v104_v41 = vld [vmem:[#allocation2 + $0x78] sm:$0xff]  ;;  %v735_v42 = vpack.c.bf16 %v194_v38, %v193_v37  ;;  %v196_v44 = vld [vmem:[#allocation5 + $0x68] sm:$0xff]  ;;  %v1075_v47 = vld [vmem:[%s1124_s0] sm:$0xff] }
  0x54   :  { %725 = vmatprep.subr.bf16.mxu1 %v925_v0  ;;  %v717_v45 = vpack.c.bf16 %v104_v41, %v103_v40  ;;  %v738_v46 = vpack.c.bf16 %v196_v44, %v195_v43  ;;  %v197_v48 = vld [vmem:[#allocation5 + $0x70] sm:$0xff]  ;;  %v198_v49 = vld [vmem:[#allocation5 + $0x78] sm:$0xff]  ;;  %v277_v51 = vld [vmem:[#allocation7] sm:$0xff] }
  0x55   :  { %703 = vmatpush3.bf16.msra.mxu0 %v702_v14  ;;  %v741_v50 = vpack.c.bf16 %v198_v49, %v197_v48  ;;  %v278_v52 = vld [vmem:[#allocation7 + $0x8] sm:$0xff]  ;;  %v279_v54 = vld [vmem:[#allocation7 + $0x10] sm:$0xff]  ;;  %v280_v55 = vld [vmem:[#allocation7 + $0x18] sm:$0xff] }
  0x56   :  { %704 = vmatprep.subr.bf16.mxu0 %v925_v0  ;;  %v744_v53 = vpack.c.bf16 %v278_v52, %v277_v51  ;;  %v747_v56 = vpack.c.bf16 %v280_v55, %v279_v54  ;;  %v281_v57 = vld [vmem:[#allocation7 + $0x20] sm:$0xff]  ;;  %v282_v58 = vld [vmem:[#allocation7 + $0x28] sm:$0xff]  ;;  %v283_v60 = vld [vmem:[#allocation7 + $0x30] sm:$0xff] }
  0x57   :  { %727 = vmatpush3.bf16.msra.mxu1 %v726_v24  ;;  %v750_v59 = vpack.c.bf16 %v282_v58, %v281_v57  ;;  %v284_v61 = vld [vmem:[#allocation7 + $0x38] sm:$0xff]  ;;  %v285_v63 = vld [vmem:[#allocation7 + $0x40] sm:$0xff]  ;;  %v286_v2 = vld [vmem:[#allocation7 + $0x48] sm:$0xff] }
  0x58   :  { %728 = vmatprep.subr.bf16.mxu1 %v925_v0  ;;  %v753_v62 = vpack.c.bf16 %v284_v61, %v283_v60  ;;  %v756_v3 = vpack.c.bf16 %v286_v2, %v285_v63  ;;  %v287_v4 = vld [vmem:[#allocation7 + $0x50] sm:$0xff]  ;;  %v288_v5 = vld [vmem:[#allocation7 + $0x58] sm:$0xff]  ;;  %v289_v7 = vld [vmem:[#allocation7 + $0x60] sm:$0xff] }
  0x59   :  { %706 = vmatpush3.bf16.msra.mxu0 %v705_v21  ;;  %v759_v6 = vpack.c.bf16 %v288_v5, %v287_v4  ;;  %v290_v8 = vld [vmem:[#allocation7 + $0x68] sm:$0xff]  ;;  %v483_v10 = vld [vmem:[%s1126_s2] ss:$0 sm:$0xff]  ;;  %v373_v18 = vld [vmem:[#allocation8 + $0x10] sm:$0xff] }
  0x5a   :  { %707 = vmatprep.subr.bf16.mxu0 %v925_v0  ;;  %v762_v9 = vpack.c.bf16 %v290_v8, %v289_v7  ;;  %v371_v11 = vld [vmem:[#allocation8] sm:$0xff]  ;;  %v372_v12 = vld [vmem:[#allocation8 + $0x8] sm:$0xff]  ;;  %v374_v19 = vld [vmem:[#allocation8 + $0x18] sm:$0xff] }
  0x5b   :  { %730 = vmatpush3.bf16.msra.mxu1 %v729_v30  ;;  %v768_v16 = vpack.c.bf16 %v372_v12, %v371_v11  ;;  %v771_v20 = vpack.c.bf16 %v374_v19, %v373_v18  ;;  %v375_v21 = vld [vmem:[#allocation8 + $0x20] sm:$0xff]  ;;  %v376_v22 = vld [vmem:[#allocation8 + $0x28] sm:$0xff]  ;;  %v377_v24 = vld [vmem:[#allocation8 + $0x30] sm:$0xff] }
  0x5c   :  { %731 = vmatprep.subr.bf16.mxu1 %v925_v0  ;;  %v774_v23 = vpack.c.bf16 %v376_v22, %v375_v21  ;;  %v378_v25 = vld [vmem:[#allocation8 + $0x38] sm:$0xff]  ;;  %v380_v28 = vld [vmem:[#allocation8 + $0x48] sm:$0xff]  ;;  %v383_v32 = vld [vmem:[#allocation8 + $0x60] sm:$0xff] }
  0x5d   :  { %709 = vmatpush3.bf16.msra.mxu0 %v708_v27  ;;  %v777_v26 = vpack.c.bf16 %v378_v25, %v377_v24  ;;  %v379_v27 = vld [vmem:[#allocation8 + $0x40] sm:$0xff]  ;;  %v382_v30 = vld [vmem:[#allocation8 + $0x58] sm:$0xff]  ;;  %v291_v35 = vld [vmem:[#allocation7 + $0x70] sm:$0xff] }
  0x5e   :  { %710 = vmatprep.subr.bf16.mxu0 %v925_v0  ;;  %v780_v29 = vpack.c.bf16 %v380_v28, %v379_v27  ;;  %v385_v38 = vld [vmem:[#allocation8 + $0x70] sm:$0xff]  ;;  %v484_v41 = vld [vmem:[%s1128_s4] ss:$0 sm:$0xff]  ;;  %s928_s4 = smov [#allocation10]  }
  0x5f   :  { %733 = vmatpush3.bf16.msra.mxu1 %v732_v36  ;;  %v292_v36 = vld [vmem:[#allocation7 + $0x78] sm:$0xff]  ;;  %v485_v48 = vld [vmem:[%s1130_s6] ss:$0 sm:$0xff]  ;;  %s472_s23 = sshll.u32 %s928_s4, 4  ;;  %s473_s23 = int_to_ptr.vmem [resolvable:$true] %s472_s23 }
  0x60   :  { %734 = vmatprep.subr.bf16.mxu1 %v925_v0  ;;  %v765_v37 = vpack.c.bf16 %v292_v36, %v291_v35  ;;  %v486_v49 = vld [vmem:[%s1132_s8] ss:$0 sm:$0xff]  ;;  %s889_s24 = scalar_lea.vmem %s473_s23, 128  ;;  %p894_p5 = scmp.lt.s32.totalorder %s473_s23, %s473_s23 }
  0x61   :  { %712 = vmatpush3.bf16.msra.mxu0 %v711_v33  ;;  %v384_v33 = vld [vmem:[#allocation8 + $0x68] sm:$0xff]  ;;  %p890_p4 = scmp.ne.s32.totalorder %s473_s23, %s889_s24  ;;  %p895_p6 = scmp.lt.s32.totalorder %s889_s24, %s889_s24 }
  0x62   :  { %713 = vmatprep.subr.bf16.mxu0 %v925_v0  ;;  %v786_v34 = vpack.c.bf16 %v384_v33, %v383_v32 }
  0x63   :  { %736 = vmatpush3.bf16.msra.mxu1 %v735_v42  ;;  %p896_p7 = por %p895_p6, %p894_p5 }
  0x64   :  { %737 = vmatprep.subr.bf16.mxu1 %v925_v0 }
  0x65   :  { %715 = vmatpush3.bf16.msra.mxu0 %v714_v39  ;;  %v386_v39 = vld [vmem:[#allocation8 + $0x78] sm:$0xff]  ;;  %p897_p8 = pnand %p896_p7, %p890_p4 }
  0x66   :  { %716 = vmatprep.subr.bf16.mxu0 %v925_v0  ;;  %v789_v40 = vpack.c.bf16 %v386_v39, %v385_v38 }
  0x67   :  { %739 = vmatpush3.bf16.msra.mxu1 %v738_v46 }
  0x68   :  { %740 = vmatprep.subr.bf16.mxu1 %v925_v0 }
  0x69   :  { %718 = vmatpush3.bf16.msra.mxu0 %v717_v45 }
  0x6a   :  { %743 = vmatprep.subr.bf16.mxu0 %v925_v0 }
  0x6b   :  { %742 = vmatpush3.bf16.msra.mxu1 %v741_v50 }
  0x6c   :  { %588 = vmatmul.mubr.f32.vlgmr.msra.gmra.mrb[0].mxu0 %v1075_v47  ;;  %767 = vmatprep.subr.bf16.mxu1 %v925_v0 }
  0x6d   :  { %657 = vmatprep.mubr.msk.f32.mxu0 %vm926_vm0, %v927_v1  ;;  %745 = vmatpush3.bf16.msra.mxu0 %v744_v53 }
  0x6e   :  { %746 = vmatprep.subr.bf16.mxu0 %v925_v0 }
  0x71   :  { %748 = vmatpush3.bf16.msra.mxu0 %v747_v56 }
  0x72   :  { %749 = vmatprep.subr.bf16.mxu0 %v925_v0 }
  0x75   :  { %751 = vmatpush3.bf16.msra.mxu0 %v750_v59 }
  0x76   :  { %752 = vmatprep.subr.bf16.mxu0 %v925_v0 }
  0x79   :  { %754 = vmatpush3.bf16.msra.mxu0 %v753_v62 }
  0x7a   :  { %755 = vmatprep.subr.bf16.mxu0 %v925_v0 }
  0x7d   :  { %757 = vmatpush3.bf16.msra.mxu0 %v756_v3 }
  0x7e   :  { %758 = vmatprep.subr.bf16.mxu0 %v925_v0 }
  0x81   :  { %760 = vmatpush3.bf16.msra.mxu0 %v759_v6 }
  0x82   :  { %761 = vmatprep.subr.bf16.mxu0 %v925_v0 }
  0x85   :  { %763 = vmatpush3.bf16.msra.mxu0 %v762_v9 }
  0x86   :  { %764 = vmatprep.subr.bf16.mxu0 %v925_v0 }
  0x89   :  { %766 = vmatpush3.bf16.msra.mxu0 %v765_v37 }
 0x13f   :  { %v178_v13 = vpop.f32.mrb[0].mxu0 }
 0x140   :  { %v179_v14 = vadd.f32 %v483_v10, %v178_v13  ;;  %v589_v15 = vpop.f32.mrb[1].mxu0 }
 0x142   :  { %v182_v17 = vmax.f32 %v179_v14, 0.0 }
 0x144   :  { %623 = vmatmul.mubr.f32.vlgmr.msra.gmra.mrb[0].mxu1 %v182_v17 }
 0x145   :  { %769 = vmatpush3.bf16.msra.mxu1 %v768_v16  ;;  %692 = vmatprep.mubr.msk.f32.mxu1 %vm926_vm0, %v927_v1  ;;  %v381_v1 = vld [vmem:[#allocation8 + $0x50] sm:$0xff] }
 0x146   :  { %770 = vmatprep.subr.bf16.mxu1 %v925_v0  ;;  %v783_v31 = vpack.c.bf16 %v382_v30, %v381_v1 }
 0x149   :  { %772 = vmatpush3.bf16.msra.mxu1 %v771_v20 }
 0x14a   :  { %773 = vmatprep.subr.bf16.mxu1 %v925_v0 }
 0x14d   :  { %775 = vmatpush3.bf16.msra.mxu1 %v774_v23 }
 0x14e   :  { %776 = vmatprep.subr.bf16.mxu1 %v925_v0 }
 0x151   :  { %778 = vmatpush3.bf16.msra.mxu1 %v777_v26 }
 0x152   :  { %779 = vmatprep.subr.bf16.mxu1 %v925_v0 }
 0x155   :  { %781 = vmatpush3.bf16.msra.mxu1 %v780_v29 }
 0x156   :  { %782 = vmatprep.subr.bf16.mxu1 %v925_v0 }
 0x159   :  { %784 = vmatpush3.bf16.msra.mxu1 %v783_v31 }
 0x15a   :  { %785 = vmatprep.subr.bf16.mxu1 %v925_v0 }
 0x15d   :  { %787 = vmatpush3.bf16.msra.mxu1 %v786_v34 }
 0x15e   :  { %788 = vmatprep.subr.bf16.mxu1 %v925_v0 }
 0x161   :  { %790 = vmatpush3.bf16.msra.mxu1 %v789_v40 }
 0x164   :  { %693 = vmatmul.mubr.f32.vlgmr.msra.gmra.mrb[2].mxu1 %v1075_v47 }
 0x217   :  { %v272_v42 = vpop.f32.mrb[0].mxu1 }
 0x218   :  { %v273_v43 = vadd.f32 %v484_v41, %v272_v42  ;;  %v624_v44 = vpop.f32.mrb[1].mxu1 }
 0x21a   :  { %v276_v45 = vmax.f32 %v273_v43, 0.0 }
 0x21c   :  { %658 = vmatmul.mubr.f32.vlgmr.msra.gmra.mrb[2].mxu0 %v276_v45 }
 0x237   :  { %v460_v0 = vpop.f32.mrb[2].mxu1 }
 0x238   :  { %v694_v46 = vpop.f32.mrb[3].mxu1  ;;  %v461_v52 = vadd.f32 %v486_v49, %v460_v0 }
 0x2ef   :  { %v366_v47 = vpop.f32.mrb[2].mxu0 }
 0x2f0   :  { %v367_v50 = vadd.f32 %v485_v48, %v366_v47  ;;  %v659_v51 = vpop.f32.mrb[3].mxu0 }
 0x2f2   :  { %v370_v53 = vmax.f32 %v367_v50, 0.0 }
 0x2f4   :  { %v464_v54 = vadd.f32 %v461_v52, %v370_v53 }
 0x2f6   :  { %465 = vst [vmem:[#allocation10] sm:$0xff] %v464_v54 }
 0x2f7   :  { %900 = shalt.err (!%p897_p8)
}
 0x2f8   :  { %s901_s8 = scalar_lea.hbm %s1133_s9, 128 }
 0x2f9   :  { %p902_p9 = scmp.ne.s32.totalorder %s1133_s9, %s901_s8  ;;  %p905_p10 = scmp.lt.u32.totalorder %s901_s8, %s1133_s9 }
 0x2fb   :  { %p907_p11 = pnand %p905_p10, %p902_p9 }
 0x2fd   :  { %910 = shalt.err (!%p907_p11)
}
 0x2fe   :  { %475 = dma.vmem_to_hbm [thread:$0]  %s473_s23, 128, %s1133_s9, [#allocation4]  }
 0x2ff   :  { %917 = dma.done.wait [#allocation4], 128  }
 0x300   :  { %918 = vsyncadd [#allocation4], 4294967168 }
 0x301   :  { %479 = vsyncpa [#allocation3], 1 }
 0x302   :  { %480 = vsyncpa [#allocation6], 1 }
 0x303   :  { %481 = vsyncpa [#allocation9], 1 }
 0x304   :  { %482 = vsyncpa [#allocation4], 1 }

// kernel: _fc_forward_impl.1
= control target key start
LH: loop header
LB: loop body
LE: loop exit
PB: predicated region body
PF: predicated region fallthrough
CT: control target
= control target key end

     0   :  { %14 = vsyncpa [#allocation3], 0  ;;  %s1124_s0 = inlined_call_operand.vmem [shape: f32[8,128], index: 0, kind: input, shape index: {}]   ;;  %s1125_s1 = inlined_call_operand.hbm [shape: f32[128,128], index: 1, kind: input, shape index: {}]   ;;  %s1126_s2 = inlined_call_operand.vmem [shape: f32[1,128], index: 2, kind: input, shape index: {}]   ;;  %s1127_s3 = inlined_call_operand.hbm [shape: f32[128,128], index: 3, kind: input, shape index: {}]   ;;  %s1128_s4 = inlined_call_operand.vmem [shape: f32[1,128], index: 4, kind: input, shape index: {}]   ;;  %s1129_s5 = inlined_call_operand.hbm [shape: f32[128,128], index: 5, kind: input, shape index: {}]   ;;  %s1130_s6 = inlined_call_operand.vmem [shape: f32[1,128], index: 6, kind: input, shape index: {}]   ;;  %s1131_s7 = inlined_call_operand.hbm [shape: f32[128,128], index: 7, kind: input, shape index: {}]   ;;  %s1132_s8 = inlined_call_operand.vmem [shape: f32[1,128], index: 8, kind: input, shape index: {}]   ;;  %s1133_s9 = inlined_call_operand.hbm [shape: f32[8,128], index: 9, kind: output, shape index: {}]  }
   0x1   :  { %15 = vsyncpa [#allocation6], 0 }
   0x2   :  { %16 = vsyncpa [#allocation9], 0 }
   0x3   :  { %17 = vsyncpa [#allocation4], 0  ;;  %s919_s30 = smov [#allocation5]   ;;  %s920_s11 = smov [#allocation2]  }
   0x4   :  { %s39_s10 = sshll.u32 %s919_s30, 4  ;;  %s25_s12 = sshll.u32 %s920_s11, 4  ;;  %s40_s10 = int_to_ptr.vmem [resolvable:$true] %s39_s10  ;;  %s979_s12 = int_to_ptr.vmem [resolvable:$true] %s25_s12 }
   0x5   :  { %s801_s15 = scalar_lea.hbm %s1127_s3, 2048 }
   0x6   :  { %p802_p0 = scmp.ne.s32.totalorder %s1127_s3, %s801_s15  ;;  %p805_p1 = scmp.lt.u32.totalorder %s801_s15, %s1127_s3 }
   0x8   :  { %p807_p2 = pnand %p805_p1, %p802_p0 }
   0xa   :  { %810 = shalt.err (!%p807_p2)
}
   0xb   :  { %s811_s20 = scalar_lea.vmem %s40_s10, 2048  ;;  %p816_p4 = scmp.lt.s32.totalorder %s40_s10, %s40_s10 }
   0xc   :  { %p812_p3 = scmp.ne.s32.totalorder %s40_s10, %s811_s20  ;;  %p817_p5 = scmp.lt.s32.totalorder %s811_s20, %s811_s20 }
   0xe   :  { %p818_p6 = por %p817_p5, %p816_p4 }
  0x10   :  { %p819_p7 = pnand %p818_p6, %p812_p3 }
  0x12   :  { %822 = shalt.err (!%p819_p7)
}
  0x13   :  { %s921_s21 = smov 128   ;;  %s922_s22 = smov 8  }
  0x14   :  { %45 = dma.hbm_to_vmem [thread:$0]  %s1127_s3, 2048, %s40_s10, [#allocation6], %s921_s21, %s921_s21, %s922_s22  }
  0x15   :  { %s823_s27 = scalar_lea.hbm %s1125_s1, 2048 }
  0x16   :  { %p824_p8 = scmp.ne.s32.totalorder %s1125_s1, %s823_s27  ;;  %p827_p9 = scmp.lt.u32.totalorder %s823_s27, %s1125_s1 }
  0x18   :  { %p829_p10 = pnand %p827_p9, %p824_p8 }
  0x1a   :  { %832 = shalt.err (!%p829_p10)
}
  0x1b   :  { %s833_s13 = scalar_lea.vmem %s979_s12, 2048  ;;  %p838_p12 = scmp.lt.s32.totalorder %s979_s12, %s979_s12 }
  0x1c   :  { %p834_p11 = scmp.ne.s32.totalorder %s979_s12, %s833_s13  ;;  %p839_p13 = scmp.lt.s32.totalorder %s833_s13, %s833_s13 }
  0x1e   :  { %p840_p0 = por %p839_p13, %p838_p12 }
  0x20   :  { %p841_p1 = pnand %p840_p0, %p834_p11 }
  0x22   :  { %844 = shalt.err (!%p841_p1)
}
  0x23   :  { %31 = dma.hbm_to_vmem [thread:$0]  %s1125_s1, 2048, %s979_s12, [#allocation3], %s921_s21, %s921_s21, %s922_s22  }
  0x24   :  { %s923_s14 = smov [#allocation7]   ;;  %s924_s16 = smov [#allocation8]  }
  0x25   :  { %s53_s15 = sshll.u32 %s923_s14, 4  ;;  %s67_s17 = sshll.u32 %s924_s16, 4  ;;  %s54_s15 = int_to_ptr.vmem [resolvable:$true] %s53_s15  ;;  %s1016_s17 = int_to_ptr.vmem [resolvable:$true] %s67_s17 }
  0x26   :  { %s845_s20 = scalar_lea.hbm %s1129_s5, 2048 }
  0x27   :  { %p846_p2 = scmp.ne.s32.totalorder %s1129_s5, %s845_s20  ;;  %p849_p3 = scmp.lt.u32.totalorder %s845_s20, %s1129_s5 }
  0x29   :  { %p851_p4 = pnand %p849_p3, %p846_p2 }
  0x2b   :  { %854 = shalt.err (!%p851_p4)
}
  0x2c   :  { %s855_s1 = scalar_lea.vmem %s54_s15, 2048  ;;  %p860_p6 = scmp.lt.s32.totalorder %s54_s15, %s54_s15 }
  0x2d   :  { %p856_p5 = scmp.ne.s32.totalorder %s54_s15, %s855_s1  ;;  %p861_p7 = scmp.lt.s32.totalorder %s855_s1, %s855_s1 }
  0x2f   :  { %p862_p8 = por %p861_p7, %p860_p6 }
  0x31   :  { %p863_p9 = pnand %p862_p8, %p856_p5 }
  0x33   :  { %866 = shalt.err (!%p863_p9)
}
  0x34   :  { %59 = dma.hbm_to_vmem [thread:$0]  %s1129_s5, 2048, %s54_s15, [#allocation6], %s921_s21, %s921_s21, %s922_s22  }
  0x35   :  { %s867_s30 = scalar_lea.hbm %s1131_s7, 2048 }
  0x36   :  { %p868_p10 = scmp.ne.s32.totalorder %s1131_s7, %s867_s30  ;;  %p871_p11 = scmp.lt.u32.totalorder %s867_s30, %s1131_s7 }
  0x38   :  { %p873_p12 = pnand %p871_p11, %p868_p10 }
  0x3a   :  { %876 = shalt.err (!%p873_p12)
}
  0x3b   :  { %s877_s14 = scalar_lea.vmem %s1016_s17, 2048  ;;  %p882_p0 = scmp.lt.s32.totalorder %s1016_s17, %s1016_s17 }
  0x3c   :  { %p878_p13 = scmp.ne.s32.totalorder %s1016_s17, %s877_s14  ;;  %p883_p1 = scmp.lt.s32.totalorder %s877_s14, %s877_s14 }
  0x3e   :  { %p884_p2 = por %p883_p1, %p882_p0 }
  0x40   :  { %p885_p3 = pnand %p884_p2, %p878_p13 }
  0x42   :  { %888 = shalt.err (!%p885_p3)
}
  0x43   :  { %73 = dma.hbm_to_vmem [thread:$0]  %s1131_s7, 2048, %s1016_s17, [#allocation9], %s921_s21, %s921_s21, %s922_s22  }
  0x44   :  { %911 = dma.done.wait [#allocation3], 2048  }
  0x45   :  { %912 = vsyncadd [#allocation3], 4294965248 }
  0x46   :  { %913 = dma.done.wait [#allocation6], 4096  }
  0x47   :  { %914 = vsyncadd [#allocation6], 4294963200 }
  0x48   :  { %915 = dma.done.wait [#allocation9], 2048  }
  0x49   :  { %916 = vsyncadd [#allocation9], 4294965248  ;;  %v925_v0 = vmov 0.0|0.0   ;;  %vm926_vm0 = vmmov 0   ;;  %v927_v1 = vmov 0.0   ;;  %v89_v2 = vld [vmem:[#allocation2] sm:$0xff] }
  0x4a   :  { %695 = vmatprep.subr.bf16.mxu0 %v925_v0  ;;  %587 = vmatprep.mubr.msk.f32.mxu0 %vm926_vm0, %v927_v1  ;;  %v90_v3 = vld [vmem:[#allocation2 + $0x8] sm:$0xff]  ;;  %v91_v4 = vld [vmem:[#allocation2 + $0x10] sm:$0xff]  ;;  %v92_v6 = vld [vmem:[#allocation2 + $0x18] sm:$0xff] }
  0x4b   :  { %719 = vmatprep.subr.bf16.mxu1 %v925_v0  ;;  %622 = vmatprep.mubr.msk.f32.mxu1 %vm926_vm0, %v927_v1  ;;  %v696_v5 = vpack.c.bf16 %v90_v3, %v89_v2  ;;  %v699_v7 = vpack.c.bf16 %v92_v6, %v91_v4  ;;  %v93_v8 = vld [vmem:[#allocation2 + $0x20] sm:$0xff]  ;;  %v94_v9 = vld [vmem:[#allocation2 + $0x28] sm:$0xff]  ;;  %v185_v12 = vld [vmem:[#allocation5 + $0x10] sm:$0xff] }
  0x4c   :  { %v183_v10 = vld [vmem:[#allocation5] sm:$0xff]  ;;  %v184_v11 = vld [vmem:[#allocation5 + $0x8] sm:$0xff]  ;;  %v186_v13 = vld [vmem:[#allocation5 + $0x18] sm:$0xff]  ;;  %v702_v14 = vpack.c.bf16 %v94_v9, %v93_v8 }
  0x4d   :  { %697 = vmatpush3.bf16.msra.mxu0 %v696_v5  ;;  %v720_v15 = vpack.c.bf16 %v184_v11, %v183_v10  ;;  %v95_v16 = vld [vmem:[#allocation2 + $0x30] sm:$0xff]  ;;  %v96_v17 = vld [vmem:[#allocation2 + $0x38] sm:$0xff]  ;;  %v723_v18 = vpack.c.bf16 %v186_v13, %v185_v12  ;;  %v187_v19 = vld [vmem:[#allocation5 + $0x20] sm:$0xff] }
  0x4e   :  { %698 = vmatprep.subr.bf16.mxu0 %v925_v0  ;;  %v188_v20 = vld [vmem:[#allocation5 + $0x28] sm:$0xff]  ;;  %v705_v21 = vpack.c.bf16 %v96_v17, %v95_v16  ;;  %v97_v22 = vld [vmem:[#allocation2 + $0x40] sm:$0xff]  ;;  %v189_v25 = vld [vmem:[#allocation5 + $0x30] sm:$0xff] }
  0x4f   :  { %721 = vmatpush3.bf16.msra.mxu1 %v720_v15  ;;  %v98_v23 = vld [vmem:[#allocation2 + $0x48] sm:$0xff]  ;;  %v726_v24 = vpack.c.bf16 %v188_v20, %v187_v19  ;;  %v190_v26 = vld [vmem:[#allocation5 + $0x38] sm:$0xff]  ;;  %v99_v28 = vld [vmem:[#allocation2 + $0x50] sm:$0xff] }
  0x50   :  { %722 = vmatprep.subr.bf16.mxu1 %v925_v0  ;;  %v708_v27 = vpack.c.bf16 %v98_v23, %v97_v22  ;;  %v100_v29 = vld [vmem:[#allocation2 + $0x58] sm:$0xff]  ;;  %v729_v30 = vpack.c.bf16 %v190_v26, %v189_v25  ;;  %v191_v31 = vld [vmem:[#allocation5 + $0x40] sm:$0xff]  ;;  %v192_v32 = vld [vmem:[#allocation5 + $0x48] sm:$0xff] }
  0x51   :  { %700 = vmatpush3.bf16.msra.mxu0 %v699_v7  ;;  %v711_v33 = vpack.c.bf16 %v100_v29, %v99_v28  ;;  %v101_v34 = vld [vmem:[#allocation2 + $0x60] sm:$0xff]  ;;  %v102_v35 = vld [vmem:[#allocation2 + $0x68] sm:$0xff]  ;;  %v732_v36 = vpack.c.bf16 %v192_v32, %v191_v31  ;;  %v193_v37 = vld [vmem:[#allocation5 + $0x50] sm:$0xff] }
  0x52   :  { %701 = vmatprep.subr.bf16.mxu0 %v925_v0  ;;  %v194_v38 = vld [vmem:[#allocation5 + $0x58] sm:$0xff]  ;;  %v714_v39 = vpack.c.bf16 %v102_v35, %v101_v34  ;;  %v103_v40 = vld [vmem:[#allocation2 + $0x70] sm:$0xff]  ;;  %v195_v43 = vld [vmem:[#allocation5 + $0x60] sm:$0xff] }
  0x53   :  { %724 = vmatpush3.bf16.msra.mxu1 %v723_v18  ;;  %v104_v41 = vld [vmem:[#allocation2 + $0x78] sm:$0xff]  ;;  %v735_v42 = vpack.c.bf16 %v194_v38, %v193_v37  ;;  %v196_v44 = vld [vmem:[#allocation5 + $0x68] sm:$0xff]  ;;  %v1075_v47 = vld [vmem:[%s1124_s0] sm:$0xff] }
  0x54   :  { %725 = vmatprep.subr.bf16.mxu1 %v925_v0  ;;  %v717_v45 = vpack.c.bf16 %v104_v41, %v103_v40  ;;  %v738_v46 = vpack.c.bf16 %v196_v44, %v195_v43  ;;  %v197_v48 = vld [vmem:[#allocation5 + $0x70] sm:$0xff]  ;;  %v198_v49 = vld [vmem:[#allocation5 + $0x78] sm:$0xff]  ;;  %v277_v51 = vld [vmem:[#allocation7] sm:$0xff] }
  0x55   :  { %703 = vmatpush3.bf16.msra.mxu0 %v702_v14  ;;  %v741_v50 = vpack.c.bf16 %v198_v49, %v197_v48  ;;  %v278_v52 = vld [vmem:[#allocation7 + $0x8] sm:$0xff]  ;;  %v279_v54 = vld [vmem:[#allocation7 + $0x10] sm:$0xff]  ;;  %v280_v55 = vld [vmem:[#allocation7 + $0x18] sm:$0xff] }
  0x56   :  { %704 = vmatprep.subr.bf16.mxu0 %v925_v0  ;;  %v744_v53 = vpack.c.bf16 %v278_v52, %v277_v51  ;;  %v747_v56 = vpack.c.bf16 %v280_v55, %v279_v54  ;;  %v281_v57 = vld [vmem:[#allocation7 + $0x20] sm:$0xff]  ;;  %v282_v58 = vld [vmem:[#allocation7 + $0x28] sm:$0xff]  ;;  %v283_v60 = vld [vmem:[#allocation7 + $0x30] sm:$0xff] }
  0x57   :  { %727 = vmatpush3.bf16.msra.mxu1 %v726_v24  ;;  %v750_v59 = vpack.c.bf16 %v282_v58, %v281_v57  ;;  %v284_v61 = vld [vmem:[#allocation7 + $0x38] sm:$0xff]  ;;  %v285_v63 = vld [vmem:[#allocation7 + $0x40] sm:$0xff]  ;;  %v286_v2 = vld [vmem:[#allocation7 + $0x48] sm:$0xff] }
  0x58   :  { %728 = vmatprep.subr.bf16.mxu1 %v925_v0  ;;  %v753_v62 = vpack.c.bf16 %v284_v61, %v283_v60  ;;  %v756_v3 = vpack.c.bf16 %v286_v2, %v285_v63  ;;  %v287_v4 = vld [vmem:[#allocation7 + $0x50] sm:$0xff]  ;;  %v288_v5 = vld [vmem:[#allocation7 + $0x58] sm:$0xff]  ;;  %v289_v7 = vld [vmem:[#allocation7 + $0x60] sm:$0xff] }
  0x59   :  { %706 = vmatpush3.bf16.msra.mxu0 %v705_v21  ;;  %v759_v6 = vpack.c.bf16 %v288_v5, %v287_v4  ;;  %v290_v8 = vld [vmem:[#allocation7 + $0x68] sm:$0xff]  ;;  %v483_v10 = vld [vmem:[%s1126_s2] ss:$0 sm:$0xff]  ;;  %v373_v18 = vld [vmem:[#allocation8 + $0x10] sm:$0xff] }
  0x5a   :  { %707 = vmatprep.subr.bf16.mxu0 %v925_v0  ;;  %v762_v9 = vpack.c.bf16 %v290_v8, %v289_v7  ;;  %v371_v11 = vld [vmem:[#allocation8] sm:$0xff]  ;;  %v372_v12 = vld [vmem:[#allocation8 + $0x8] sm:$0xff]  ;;  %v374_v19 = vld [vmem:[#allocation8 + $0x18] sm:$0xff] }
  0x5b   :  { %730 = vmatpush3.bf16.msra.mxu1 %v729_v30  ;;  %v768_v16 = vpack.c.bf16 %v372_v12, %v371_v11  ;;  %v771_v20 = vpack.c.bf16 %v374_v19, %v373_v18  ;;  %v375_v21 = vld [vmem:[#allocation8 + $0x20] sm:$0xff]  ;;  %v376_v22 = vld [vmem:[#allocation8 + $0x28] sm:$0xff]  ;;  %v377_v24 = vld [vmem:[#allocation8 + $0x30] sm:$0xff] }
  0x5c   :  { %731 = vmatprep.subr.bf16.mxu1 %v925_v0  ;;  %v774_v23 = vpack.c.bf16 %v376_v22, %v375_v21  ;;  %v378_v25 = vld [vmem:[#allocation8 + $0x38] sm:$0xff]  ;;  %v380_v28 = vld [vmem:[#allocation8 + $0x48] sm:$0xff]  ;;  %v383_v32 = vld [vmem:[#allocation8 + $0x60] sm:$0xff] }
  0x5d   :  { %709 = vmatpush3.bf16.msra.mxu0 %v708_v27  ;;  %v777_v26 = vpack.c.bf16 %v378_v25, %v377_v24  ;;  %v379_v27 = vld [vmem:[#allocation8 + $0x40] sm:$0xff]  ;;  %v382_v30 = vld [vmem:[#allocation8 + $0x58] sm:$0xff]  ;;  %v291_v35 = vld [vmem:[#allocation7 + $0x70] sm:$0xff] }
  0x5e   :  { %710 = vmatprep.subr.bf16.mxu0 %v925_v0  ;;  %v780_v29 = vpack.c.bf16 %v380_v28, %v379_v27  ;;  %v385_v38 = vld [vmem:[#allocation8 + $0x70] sm:$0xff]  ;;  %v484_v41 = vld [vmem:[%s1128_s4] ss:$0 sm:$0xff]  ;;  %s928_s4 = smov [#allocation10]  }
  0x5f   :  { %733 = vmatpush3.bf16.msra.mxu1 %v732_v36  ;;  %v292_v36 = vld [vmem:[#allocation7 + $0x78] sm:$0xff]  ;;  %v485_v48 = vld [vmem:[%s1130_s6] ss:$0 sm:$0xff]  ;;  %s472_s23 = sshll.u32 %s928_s4, 4  ;;  %s473_s23 = int_to_ptr.vmem [resolvable:$true] %s472_s23 }
  0x60   :  { %734 = vmatprep.subr.bf16.mxu1 %v925_v0  ;;  %v765_v37 = vpack.c.bf16 %v292_v36, %v291_v35  ;;  %v486_v49 = vld [vmem:[%s1132_s8] ss:$0 sm:$0xff]  ;;  %s889_s24 = scalar_lea.vmem %s473_s23, 128  ;;  %p894_p5 = scmp.lt.s32.totalorder %s473_s23, %s473_s23 }
  0x61   :  { %712 = vmatpush3.bf16.msra.mxu0 %v711_v33  ;;  %v384_v33 = vld [vmem:[#allocation8 + $0x68] sm:$0xff]  ;;  %p890_p4 = scmp.ne.s32.totalorder %s473_s23, %s889_s24  ;;  %p895_p6 = scmp.lt.s32.totalorder %s889_s24, %s889_s24 }
  0x62   :  { %713 = vmatprep.subr.bf16.mxu0 %v925_v0  ;;  %v786_v34 = vpack.c.bf16 %v384_v33, %v383_v32 }
  0x63   :  { %736 = vmatpush3.bf16.msra.mxu1 %v735_v42  ;;  %p896_p7 = por %p895_p6, %p894_p5 }
  0x64   :  { %737 = vmatprep.subr.bf16.mxu1 %v925_v0 }
  0x65   :  { %715 = vmatpush3.bf16.msra.mxu0 %v714_v39  ;;  %v386_v39 = vld [vmem:[#allocation8 + $0x78] sm:$0xff]  ;;  %p897_p8 = pnand %p896_p7, %p890_p4 }
  0x66   :  { %716 = vmatprep.subr.bf16.mxu0 %v925_v0  ;;  %v789_v40 = vpack.c.bf16 %v386_v39, %v385_v38 }
  0x67   :  { %739 = vmatpush3.bf16.msra.mxu1 %v738_v46 }
  0x68   :  { %740 = vmatprep.subr.bf16.mxu1 %v925_v0 }
  0x69   :  { %718 = vmatpush3.bf16.msra.mxu0 %v717_v45 }
  0x6a   :  { %743 = vmatprep.subr.bf16.mxu0 %v925_v0 }
  0x6b   :  { %742 = vmatpush3.bf16.msra.mxu1 %v741_v50 }
  0x6c   :  { %588 = vmatmul.mubr.f32.vlgmr.msra.gmra.mrb[0].mxu0 %v1075_v47  ;;  %767 = vmatprep.subr.bf16.mxu1 %v925_v0 }
  0x6d   :  { %657 = vmatprep.mubr.msk.f32.mxu0 %vm926_vm0, %v927_v1  ;;  %745 = vmatpush3.bf16.msra.mxu0 %v744_v53 }
  0x6e   :  { %746 = vmatprep.subr.bf16.mxu0 %v925_v0 }
  0x71   :  { %748 = vmatpush3.bf16.msra.mxu0 %v747_v56 }
  0x72   :  { %749 = vmatprep.subr.bf16.mxu0 %v925_v0 }
  0x75   :  { %751 = vmatpush3.bf16.msra.mxu0 %v750_v59 }
  0x76   :  { %752 = vmatprep.subr.bf16.mxu0 %v925_v0 }
  0x79   :  { %754 = vmatpush3.bf16.msra.mxu0 %v753_v62 }
  0x7a   :  { %755 = vmatprep.subr.bf16.mxu0 %v925_v0 }
  0x7d   :  { %757 = vmatpush3.bf16.msra.mxu0 %v756_v3 }
  0x7e   :  { %758 = vmatprep.subr.bf16.mxu0 %v925_v0 }
  0x81   :  { %760 = vmatpush3.bf16.msra.mxu0 %v759_v6 }
  0x82   :  { %761 = vmatprep.subr.bf16.mxu0 %v925_v0 }
  0x85   :  { %763 = vmatpush3.bf16.msra.mxu0 %v762_v9 }
  0x86   :  { %764 = vmatprep.subr.bf16.mxu0 %v925_v0 }
  0x89   :  { %766 = vmatpush3.bf16.msra.mxu0 %v765_v37 }
 0x13f   :  { %v178_v13 = vpop.f32.mrb[0].mxu0 }
 0x140   :  { %v179_v14 = vadd.f32 %v483_v10, %v178_v13  ;;  %v589_v15 = vpop.f32.mrb[1].mxu0 }
 0x142   :  { %v182_v17 = vmax.f32 %v179_v14, 0.0 }
 0x144   :  { %623 = vmatmul.mubr.f32.vlgmr.msra.gmra.mrb[0].mxu1 %v182_v17 }
 0x145   :  { %769 = vmatpush3.bf16.msra.mxu1 %v768_v16  ;;  %692 = vmatprep.mubr.msk.f32.mxu1 %vm926_vm0, %v927_v1  ;;  %v381_v1 = vld [vmem:[#allocation8 + $0x50] sm:$0xff] }
 0x146   :  { %770 = vmatprep.subr.bf16.mxu1 %v925_v0  ;;  %v783_v31 = vpack.c.bf16 %v382_v30, %v381_v1 }
 0x149   :  { %772 = vmatpush3.bf16.msra.mxu1 %v771_v20 }
 0x14a   :  { %773 = vmatprep.subr.bf16.mxu1 %v925_v0 }
 0x14d   :  { %775 = vmatpush3.bf16.msra.mxu1 %v774_v23 }
 0x14e   :  { %776 = vmatprep.subr.bf16.mxu1 %v925_v0 }
 0x151   :  { %778 = vmatpush3.bf16.msra.mxu1 %v777_v26 }
 0x152   :  { %779 = vmatprep.subr.bf16.mxu1 %v925_v0 }
 0x155   :  { %781 = vmatpush3.bf16.msra.mxu1 %v780_v29 }
 0x156   :  { %782 = vmatprep.subr.bf16.mxu1 %v925_v0 }
 0x159   :  { %784 = vmatpush3.bf16.msra.mxu1 %v783_v31 }
 0x15a   :  { %785 = vmatprep.subr.bf16.mxu1 %v925_v0 }
 0x15d   :  { %787 = vmatpush3.bf16.msra.mxu1 %v786_v34 }
 0x15e   :  { %788 = vmatprep.subr.bf16.mxu1 %v925_v0 }
 0x161   :  { %790 = vmatpush3.bf16.msra.mxu1 %v789_v40 }
 0x164   :  { %693 = vmatmul.mubr.f32.vlgmr.msra.gmra.mrb[2].mxu1 %v1075_v47 }
 0x217   :  { %v272_v42 = vpop.f32.mrb[0].mxu1 }
 0x218   :  { %v273_v43 = vadd.f32 %v484_v41, %v272_v42  ;;  %v624_v44 = vpop.f32.mrb[1].mxu1 }
 0x21a   :  { %v276_v45 = vmax.f32 %v273_v43, 0.0 }
 0x21c   :  { %658 = vmatmul.mubr.f32.vlgmr.msra.gmra.mrb[2].mxu0 %v276_v45 }
 0x237   :  { %v460_v0 = vpop.f32.mrb[2].mxu1 }
 0x238   :  { %v694_v46 = vpop.f32.mrb[3].mxu1  ;;  %v461_v52 = vadd.f32 %v486_v49, %v460_v0 }
 0x2ef   :  { %v366_v47 = vpop.f32.mrb[2].mxu0 }
 0x2f0   :  { %v367_v50 = vadd.f32 %v485_v48, %v366_v47  ;;  %v659_v51 = vpop.f32.mrb[3].mxu0 }
 0x2f2   :  { %v370_v53 = vmax.f32 %v367_v50, 0.0 }
 0x2f4   :  { %v464_v54 = vadd.f32 %v461_v52, %v370_v53 }
 0x2f6   :  { %465 = vst [vmem:[#allocation10] sm:$0xff] %v464_v54 }
 0x2f7   :  { %900 = shalt.err (!%p897_p8)
}
 0x2f8   :  { %s901_s8 = scalar_lea.hbm %s1133_s9, 128 }
 0x2f9   :  { %p902_p9 = scmp.ne.s32.totalorder %s1133_s9, %s901_s8  ;;  %p905_p10 = scmp.lt.u32.totalorder %s901_s8, %s1133_s9 }
 0x2fb   :  { %p907_p11 = pnand %p905_p10, %p902_p9 }
 0x2fd   :  { %910 = shalt.err (!%p907_p11)
}
 0x2fe   :  { %475 = dma.vmem_to_hbm [thread:$0]  %s473_s23, 128, %s1133_s9, [#allocation4]  }
 0x2ff   :  { %917 = dma.done.wait [#allocation4], 128  }
 0x300   :  { %918 = vsyncadd [#allocation4], 4294967168 }
 0x301   :  { %479 = vsyncpa [#allocation3], 1 }
 0x302   :  { %480 = vsyncpa [#allocation6], 1 }
 0x303   :  { %481 = vsyncpa [#allocation9], 1 }
 0x304   :  { %482 = vsyncpa [#allocation4], 1 }

</bundles_post_ra>
